<compile_context>
chip_gen: v7x
topology: tpu7x:2x2x1
jax: 0.10.0
libtpu: 0.0.40
codegen_flags: <defaults>
</compile_context>

<pallas_src>
import functools

import jax
import jax.numpy as jnp
from jax import lax
from jax.experimental import pallas as pl
from jax.experimental.pallas import tpu as pltpu

LANE = 128  # TPU lane width; only the output (action) dim is padded to this.


def _round_up(n, m):
    return ((n + m - 1) // m) * m


def _dqn_kernel(x_ref, w1_ref, b1_ref, w2_ref, b2_ref, w3_ref, b3_ref, o_ref,
                *, valid_actions):
    """One batch tile of the MLP.  Matmuls: bf16 operands, f32 accumulation."""
    # Cast the streamed f32 activations to bf16 right before the MXU.
    x = x_ref[...].astype(jnp.bfloat16)

    # fc1 + ReLU (elementwise in f32)
    h1 = jnp.dot(x, w1_ref[...], preferred_element_type=jnp.float32)
    h1 = jnp.maximum(h1 + b1_ref[...], 0.0)

    # fc2 + ReLU
    h2 = jnp.dot(h1.astype(jnp.bfloat16), w2_ref[...],
                 preferred_element_type=jnp.float32)
    h2 = jnp.maximum(h2 + b2_ref[...], 0.0)

    # fc3 (output dim padded to 128 lanes for a lane-dense store)
    logits = jnp.dot(h2.astype(jnp.bfloat16), w3_ref[...],
                     preferred_element_type=jnp.float32)
    logits = logits + b3_ref[...]

    # Mask lane-padding columns so they cannot contaminate the softmax max/sum.
    col = lax.broadcasted_iota(jnp.int32, logits.shape, 1)
    logits = jnp.where(col < valid_actions, logits, jnp.float32(-1e30))

    # Numerically stable softmax over the last axis (exact f32 divide).
    m = jnp.max(logits, axis=-1, keepdims=True)
    e = jnp.exp(logits - m)
    denom = jnp.sum(e, axis=-1, keepdims=True)
    o_ref[...] = (e / denom).astype(o_ref.dtype)


def init_dqn_params(key, state_dim, action_dim, hidden_dim):
    """nn.Linear-style init: uniform(-1/sqrt(fan_in), +1/sqrt(fan_in)). W stored (in, out)."""
    ks = jax.random.split(key, 6)

    def linear(kw, kb, fan_in, fan_out):
        bound = 1.0 / jnp.sqrt(jnp.float32(fan_in))
        w = jax.random.uniform(kw, (fan_in, fan_out), jnp.float32, -bound, bound)
        b = jax.random.uniform(kb, (fan_out,), jnp.float32, -bound, bound)
        return w, b

    w1, b1 = linear(ks[0], ks[1], state_dim, hidden_dim)
    w2, b2 = linear(ks[2], ks[3], hidden_dim, hidden_dim)
    w3, b3 = linear(ks[4], ks[5], hidden_dim, action_dim)
    return (w1, b1, w2, b2, w3, b3)


def prepare_params_for_kernel(params):
    """Weights -> bf16 (true shapes); only fc3's output dim zero-padded to 128."""
    w1, b1, w2, b2, w3, b3 = params
    a_pad = _round_up(w3.shape[1], LANE)

    w1k = w1.astype(jnp.bfloat16)
    w2k = w2.astype(jnp.bfloat16)
    w3k = jnp.zeros((w3.shape[0], a_pad), jnp.bfloat16)
    w3k = w3k.at[:, : w3.shape[1]].set(w3.astype(jnp.bfloat16))

    b1k = b1.astype(jnp.float32).reshape(1, -1)
    b2k = b2.astype(jnp.float32).reshape(1, -1)
    b3k = jnp.zeros((1, a_pad), jnp.float32)
    b3k = b3k.at[0, : b3.shape[0]].set(b3.astype(jnp.float32))

    return (w1k, b1k, w2k, b2k, w3k, b3k)


def make_dqn_forward(kernel_params, action_dim, tile_b=128):
    """Returns a jitted forward(x) using the bf16 kernel parameters."""
    w1, b1, w2, b2, w3, b3 = kernel_params
    state_dim, hidden_dim = w1.shape
    a_pad = w3.shape[1]

    kernel = functools.partial(_dqn_kernel, valid_actions=action_dim)

    def fwd(x):
        b = x.shape[0]
        b_pad = _round_up(max(b, 1), tile_b)
        # Pad only the batch dim, and only when it isn't already tile-aligned.
        xk = x if b_pad == b else jnp.pad(x, ((0, b_pad - b), (0, 0)))

        grid = (b_pad // tile_b,)
        flops = 2 * b_pad * (state_dim * hidden_dim
                             + hidden_dim * hidden_dim
                             + hidden_dim * a_pad)
        bytes_accessed = (xk.size * xk.dtype.itemsize
                          + sum(int(p.size) * p.dtype.itemsize for p in kernel_params)
                          + b_pad * a_pad * 4)

        out_padded = pl.pallas_call(
            kernel,
            out_shape=jax.ShapeDtypeStruct((b_pad, a_pad), jnp.float32),
            grid=grid,
            in_specs=[
                pl.BlockSpec((tile_b, state_dim), lambda i: (i, 0)),      # x: streamed per tile
                pl.BlockSpec((state_dim, hidden_dim), lambda i: (0, 0)),  # w1: resident
                pl.BlockSpec((1, hidden_dim), lambda i: (0, 0)),          # b1: resident
                pl.BlockSpec((hidden_dim, hidden_dim), lambda i: (0, 0)), # w2: resident
                pl.BlockSpec((1, hidden_dim), lambda i: (0, 0)),          # b2: resident
                pl.BlockSpec((hidden_dim, a_pad), lambda i: (0, 0)),      # w3: resident
                pl.BlockSpec((1, a_pad), lambda i: (0, 0)),               # b3: resident
            ],
            out_specs=pl.BlockSpec((tile_b, a_pad), lambda i: (i, 0)),    # lane-dense store
            compiler_params=pltpu.CompilerParams(
                dimension_semantics=("parallel",)),
            cost_estimate=pl.CostEstimate(
                flops=flops,
                transcendentals=b_pad * a_pad,
                bytes_accessed=bytes_accessed),
        )(xk, w1, b1, w2, b2, w3, b3)

        # Consumers that can use the lane-dense (b_pad, 128) block should take
        # out_padded directly; this slice is kept for API parity with the module.
        return out_padded[:b, :action_dim]

    return jax.jit(fwd)


def reference_forward(x, params):
    """Pure-JAX reference matching the kernel's bf16 operand quantization."""
    w1, b1, w2, b2, w3, b3 = params

    def q(a):
        return a.astype(jnp.bfloat16).astype(jnp.float32)

    hi = lax.Precision.HIGHEST
    h1 = jnp.maximum(jnp.dot(q(x), q(w1), precision=hi) + b1, 0.0)
    h2 = jnp.maximum(jnp.dot(q(h1), q(w2), precision=hi) + b2, 0.0)
    logits = jnp.dot(q(h2), q(w3), precision=hi) + b3
    return jax.nn.softmax(logits, axis=-1)


if __name__ == "__main__":
    # Small model dims per the module; batch = 2 tiles of 128 so the batch-
    # pipelined grid (and v7x 2-TC sharding) is what actually runs.
    batch, state_dim, hidden_dim, action_dim = 256, 16, 32, 8
    tile_b = 128

    key = jax.random.PRNGKey(0)
    k_x, k_p = jax.random.split(key)
    x = jax.random.normal(k_x, (batch, state_dim), jnp.float32)

    params = init_dqn_params(k_p, state_dim, action_dim, hidden_dim)
    kernel_params = prepare_params_for_kernel(params)

    dqn_forward = make_dqn_forward(kernel_params, action_dim, tile_b=tile_b)
    out = jax.block_until_ready(dqn_forward(x))

    ref = reference_forward(x, params)
    assert out.shape == (batch, action_dim)
    # Exact softmax divide: only MXU accumulation order / exp rounding remain.
    assert jnp.allclose(out, ref, atol=2e-4, rtol=2e-3), float(jnp.max(jnp.abs(out - ref)))
    assert jnp.allclose(jnp.sum(out, axis=-1), 1.0, atol=1e-4)

    print("KERNEL_OK")
</pallas_src>

<mosaic_0001>
module attributes {stable_mosaic.version = 11 : i64} {
  func.func @_dqn_kernel(%arg0: i32, %arg1: memref<128x16xf32, #tpu.memory_space<vmem>>, %arg2: memref<16x32xbf16, #tpu.memory_space<vmem>>, %arg3: memref<1x32xf32, #tpu.memory_space<vmem>>, %arg4: memref<32x32xbf16, #tpu.memory_space<vmem>>, %arg5: memref<1x32xf32, #tpu.memory_space<vmem>>, %arg6: memref<32x128xbf16, #tpu.memory_space<vmem>>, %arg7: memref<1x128xf32, #tpu.memory_space<vmem>>, %arg8: memref<128x128xf32, #tpu.memory_space<vmem>>) attributes {dimension_semantics = [#tpu.dimension_semantics<parallel>], iteration_bounds = array<i64: 2>, scalar_prefetch = 0 : i64, scratch_operands = 0 : i64, tpu.core_type = #tpu.core_type<tc>, window_params = [{transform_indices = @transform_0, window_bounds = array<i64: 128, 16>}, {pipeline_mode = #tpu.pipeline_mode<synchronous>, transform_indices = @transform_1, window_bounds = array<i64: 16, 32>}, {pipeline_mode = #tpu.pipeline_mode<synchronous>, transform_indices = @transform_2, window_bounds = array<i64: 1, 32>}, {pipeline_mode = #tpu.pipeline_mode<synchronous>, transform_indices = @transform_3, window_bounds = array<i64: 32, 32>}, {pipeline_mode = #tpu.pipeline_mode<synchronous>, transform_indices = @transform_4, window_bounds = array<i64: 1, 32>}, {pipeline_mode = #tpu.pipeline_mode<synchronous>, transform_indices = @transform_5, window_bounds = array<i64: 32, 128>}, {pipeline_mode = #tpu.pipeline_mode<synchronous>, transform_indices = @transform_6, window_bounds = array<i64: 1, 128>}, {transform_indices = @transform_7, window_bounds = array<i64: 128, 128>}]} {
    %c0 = arith.constant 0 : index
    %c0_0 = arith.constant 0 : index
    %0 = vector.load %arg1[%c0, %c0_0] : memref<128x16xf32, #tpu.memory_space<vmem>>, vector<128x16xf32>
    %1 = arith.truncf %0 : vector<128x16xf32> to vector<128x16xbf16>
    %c0_1 = arith.constant 0 : index
    %c0_2 = arith.constant 0 : index
    %2 = vector.load %arg2[%c0_1, %c0_2] : memref<16x32xbf16, #tpu.memory_space<vmem>>, vector<16x32xbf16>
    %cst = arith.constant dense<0.000000e+00> : vector<128x32xf32>
    %3 = tpu.matmul %1, %2, %cst {dimension_numbers = #tpu.dot_dimension_numbers<[1], [0], [0], [1], [0, 0, 1, 1], [], []>} : vector<128x16xbf16>, vector<16x32xbf16>, vector<128x32xf32> -> vector<128x32xf32>
    %c0_3 = arith.constant 0 : index
    %c0_4 = arith.constant 0 : index
    %4 = vector.load %arg3[%c0_3, %c0_4] : memref<1x32xf32, #tpu.memory_space<vmem>>, vector<1x32xf32>
    %5 = vector.broadcast %4 : vector<1x32xf32> to vector<128x32xf32>
    %6 = arith.addf %3, %5 : vector<128x32xf32>
    %cst_5 = arith.constant 0.000000e+00 : f32
    %7 = vector.broadcast %cst_5 : f32 to vector<128x32xf32>
    %8 = arith.maximumf %6, %7 : vector<128x32xf32>
    %9 = arith.truncf %8 : vector<128x32xf32> to vector<128x32xbf16>
    %c0_6 = arith.constant 0 : index
    %c0_7 = arith.constant 0 : index
    %10 = vector.load %arg4[%c0_6, %c0_7] : memref<32x32xbf16, #tpu.memory_space<vmem>>, vector<32x32xbf16>
    %cst_8 = arith.constant dense<0.000000e+00> : vector<128x32xf32>
    %11 = tpu.matmul %9, %10, %cst_8 {dimension_numbers = #tpu.dot_dimension_numbers<[1], [0], [0], [1], [0, 0, 1, 1], [], []>} : vector<128x32xbf16>, vector<32x32xbf16>, vector<128x32xf32> -> vector<128x32xf32>
    %c0_9 = arith.constant 0 : index
    %c0_10 = arith.constant 0 : index
    %12 = vector.load %arg5[%c0_9, %c0_10] : memref<1x32xf32, #tpu.memory_space<vmem>>, vector<1x32xf32>
    %13 = vector.broadcast %12 : vector<1x32xf32> to vector<128x32xf32>
    %14 = arith.addf %11, %13 : vector<128x32xf32>
    %cst_11 = arith.constant 0.000000e+00 : f32
    %15 = vector.broadcast %cst_11 : f32 to vector<128x32xf32>
    %16 = arith.maximumf %14, %15 : vector<128x32xf32>
    %17 = arith.truncf %16 : vector<128x32xf32> to vector<128x32xbf16>
    %c0_12 = arith.constant 0 : index
    %c0_13 = arith.constant 0 : index
    %18 = vector.load %arg6[%c0_12, %c0_13] : memref<32x128xbf16, #tpu.memory_space<vmem>>, vector<32x128xbf16>
    %cst_14 = arith.constant dense<0.000000e+00> : vector<128x128xf32>
    %19 = tpu.matmul %17, %18, %cst_14 {dimension_numbers = #tpu.dot_dimension_numbers<[1], [0], [0], [1], [0, 0, 1, 1], [], []>} : vector<128x32xbf16>, vector<32x128xbf16>, vector<128x128xf32> -> vector<128x128xf32>
    %c0_15 = arith.constant 0 : index
    %c0_16 = arith.constant 0 : index
    %20 = vector.load %arg7[%c0_15, %c0_16] : memref<1x128xf32, #tpu.memory_space<vmem>>, vector<1x128xf32>
    %21 = vector.broadcast %20 : vector<1x128xf32> to vector<128x128xf32>
    %22 = arith.addf %19, %21 : vector<128x128xf32>
    %23 = tpu.iota {dimensions = array<i32: 1>} : vector<128x128xi32>
    %c8_i32 = arith.constant 8 : i32
    %24 = vector.broadcast %c8_i32 : i32 to vector<128x128xi32>
    %25 = arith.cmpi slt, %23, %24 : vector<128x128xi32>
    %cst_17 = arith.constant -1.000000e+30 : f32
    %26 = vector.broadcast %cst_17 : f32 to vector<128x128xf32>
    %27 = arith.select %25, %22, %26 : vector<128x128xi1>, vector<128x128xf32>
    %cst_18 = arith.constant dense<0xFF800000> : vector<128xf32>
    %28 = vector.multi_reduction <maximumf>, %27, %cst_18 [1] : vector<128x128xf32> to vector<128xf32>
    %29 = vector.shape_cast %28 : vector<128xf32> to vector<128x1xf32>
    %30 = vector.broadcast %29 : vector<128x1xf32> to vector<128x128xf32>
    %31 = arith.subf %27, %30 : vector<128x128xf32>
    %32 = math.exp %31 : vector<128x128xf32>
    %cst_19 = arith.constant dense<0.000000e+00> : vector<128xf32>
    %33 = vector.multi_reduction <add>, %32, %cst_19 [1] : vector<128x128xf32> to vector<128xf32>
    %34 = vector.shape_cast %33 : vector<128xf32> to vector<128x1xf32>
    %35 = vector.broadcast %34 : vector<128x1xf32> to vector<128x128xf32>
    %36 = arith.divf %32, %35 : vector<128x128xf32>
    %c0_20 = arith.constant 0 : index
    %c0_21 = arith.constant 0 : index
    %37 = vector.load %arg8[%c0_20, %c0_21] : memref<128x128xf32, #tpu.memory_space<vmem>>, vector<128x128xf32>
    tpu.vector_store %arg8[%c0_20, %c0_21], %36 {strides = array<i32>} : memref<128x128xf32, #tpu.memory_space<vmem>>, vector<128x128xf32>,
    return
  }
  func.func @transform_0(%arg0: i32) -> (i32, i32) {
    %c0_i32 = arith.constant 0 : i32
    %c0_i32_0 = arith.constant 0 : i32
    return %arg0, %c0_i32 : i32, i32
  }
  func.func @transform_1(%arg0: i32) -> (i32, i32) {
    %c0_i32 = arith.constant 0 : i32
    %c0_i32_0 = arith.constant 0 : i32
    %c0_i32_1 = arith.constant 0 : i32
    return %c0_i32, %c0_i32_0 : i32, i32
  }
  func.func @transform_2(%arg0: i32) -> (i32, i32) {
    %c0_i32 = arith.constant 0 : i32
    %c0_i32_0 = arith.constant 0 : i32
    %c0_i32_1 = arith.constant 0 : i32
    return %c0_i32, %c0_i32_0 : i32, i32
  }
  func.func @transform_3(%arg0: i32) -> (i32, i32) {
    %c0_i32 = arith.constant 0 : i32
    %c0_i32_0 = arith.constant 0 : i32
    %c0_i32_1 = arith.constant 0 : i32
    return %c0_i32, %c0_i32_0 : i32, i32
  }
  func.func @transform_4(%arg0: i32) -> (i32, i32) {
    %c0_i32 = arith.constant 0 : i32
    %c0_i32_0 = arith.constant 0 : i32
    %c0_i32_1 = arith.constant 0 : i32
    return %c0_i32, %c0_i32_0 : i32, i32
  }
  func.func @transform_5(%arg0: i32) -> (i32, i32) {
    %c0_i32 = arith.constant 0 : i32
    %c0_i32_0 = arith.constant 0 : i32
    %c0_i32_1 = arith.constant 0 : i32
    return %c0_i32, %c0_i32_0 : i32, i32
  }
  func.func @transform_6(%arg0: i32) -> (i32, i32) {
    %c0_i32 = arith.constant 0 : i32
    %c0_i32_0 = arith.constant 0 : i32
    %c0_i32_1 = arith.constant 0 : i32
    return %c0_i32, %c0_i32_0 : i32, i32
  }
  func.func @transform_7(%arg0: i32) -> (i32, i32) {
    %c0_i32 = arith.constant 0 : i32
    %c0_i32_0 = arith.constant 0 : i32
    return %arg0, %c0_i32 : i32, i32
  }
}

</mosaic_0001>

<bundles_post_ra>
// kernel: fwd.1
= control target key start
LH: loop header
LB: loop body
LE: loop exit
PB: predicated region body
PF: predicated region fallthrough
CT: control target
= control target key end

     0   :  { %s1273_s24 = smov 0   ;;  %s1506_s0 = inlined_call_operand.vmem [shape: f32[256,16], index: 0, kind: input, shape index: {}]   ;;  %s1507_s1 = inlined_call_operand.vmem [shape: bf16[16,32], index: 1, kind: input, shape index: {}]   ;;  %s1508_s2 = inlined_call_operand.vmem [shape: f32[1,32], index: 2, kind: input, shape index: {}]   ;;  %s1509_s3 = inlined_call_operand.vmem [shape: bf16[32,32], index: 3, kind: input, shape index: {}]   ;;  %s1510_s4 = inlined_call_operand.vmem [shape: f32[1,32], index: 4, kind: input, shape index: {}]   ;;  %s1511_s5 = inlined_call_operand.vmem [shape: bf16[32,128], index: 5, kind: input, shape index: {}]   ;;  %s1512_s6 = inlined_call_operand.vmem [shape: f32[1,128], index: 6, kind: input, shape index: {}]   ;;  %s1513_s7 = inlined_call_operand.vmem [shape: f32[256,128], index: 7, kind: output, shape index: {}]  }
   0x1 LB: > { %s1016_s25 = sadd.s32 4294967295, %s1231_s24   ;;  %p1020_p0 = scmp.ge.s32.totalorder %s1231_s24, 1  ;;  %s1231_s24 = sphi %s1273_s24, %s17_s24  }
   0x2   : > { %p238_p1 = scmp.lt.s32.totalorder %s1231_s24, 3 }
   0x4   : > { %p239_p2 = pnand %p1020_p0, %p238_p1 }
   0x5   : > { %v1156_v0 = vld [vmem:[%s1507_s1] sm:$0xff] (!%p239_p2)   ;;  %s1021_s28 = sshll.u32 (!%p239_p2), %s1016_s25, 4  ;;  %vm322_vm0 = vcmask (!%p239_p2), 130048   ;;  %v1158_v26 = vld [vmem:[%s1509_s3 + $0x8] sm:$0xff] (!%p239_p2)   ;;  %vm491_vm1 = vcmask (!%p239_p2), 261120  }
   0x6   : > { %242 = sbr.rel (%p239_p2) target bundleno = 1024 (0x400), region = 48  ;;  %p271_p3 = scmp.lt.s32.totalorder (!%p239_p2), %s1021_s28, 31  ;;  %1088 = vmatprep.subr.bf16.mxu0 (!%p239_p2), %v1156_v0  ;;  %1146 = vmatprep.subr.bf16.mxu1 (!%p239_p2), %v1156_v0  ;;  %v1157_v1 = vld [vmem:[%s1509_s3] sm:$0xff] (!%p239_p2)  }
   0x7   : > { %1089 = vmatpush3.bf16.msra.mxu0 (!%p239_p2), %v1156_v0  ;;  %1147 = vmatpush3.bf16.msra.mxu1 (!%p239_p2), %v1156_v0  ;;  %v1159_v27 = vld [vmem:[%s1511_s5] sm:$0xff] (!%p239_p2)  }
   0x8   : > { %1106 = vmatprep.subr.bf16.mxu1 (!%p239_p2), %v1157_v1  ;;  %1126 = vmatprep.subr.bf16.mxu0 (!%p239_p2), %v1159_v27  ;;  %v1025_v28 = vld [vmem:[%s1508_s2] ss:$0 sm:$0xff] (!%p239_p2) }
   0xd   : > { %s1515_s28 = smov (!%p271_p3, %s1021_s28), 31 }
   0xe   : > { %s1022_s8 = sshll.u32 %s1515_s28, 3 }
   0xf   : > { %s274_s11 = scalar_lea.vmem %s1506_s0, %s1022_s8  ;;  %s1469_s27 = scalar_lea.vmem %s1513_s7, %s1022_s8 }
  0x10   : > { %v283_v2 = vld [vmem:[%s274_s11] sm:$0xff]  ;;  %v284_v3 = vld [vmem:[%s274_s11 + $0x8] sm:$0xff]  ;;  %v285_v4 = vld [vmem:[%s274_s11 + $0x10] sm:$0xff] }
  0x11   : > { %v299_v5 = vpack.c.bf16 %v284_v3, %v283_v2  ;;  %v286_v6 = vld [vmem:[%s274_s11 + $0x18] sm:$0xff]  ;;  %v287_v7 = vld [vmem:[%s274_s11 + $0x20] sm:$0xff]  ;;  %v288_v8 = vld [vmem:[%s274_s11 + $0x28] sm:$0xff] }
  0x12   : > { %v300_v9 = vpack.c.bf16 %v286_v6, %v285_v4  ;;  %v301_v10 = vpack.c.bf16 %v288_v8, %v287_v7  ;;  %v291_v11 = vld [vmem:[%s274_s11 + $0x40] sm:$0xff]  ;;  %v292_v12 = vld [vmem:[%s274_s11 + $0x48] sm:$0xff]  ;;  %v293_v13 = vld [vmem:[%s274_s11 + $0x50] sm:$0xff] }
  0x13   : > { %1090 = vmatprep.mubr.msk.bf16.mxu0 %vm322_vm0, %v299_v5  ;;  %v294_v14 = vld [vmem:[%s274_s11 + $0x58] sm:$0xff]  ;;  %v303_v15 = vpack.c.bf16 %v292_v12, %v291_v11  ;;  %v295_v17 = vld [vmem:[%s274_s11 + $0x60] sm:$0xff]  ;;  %v296_v18 = vld [vmem:[%s274_s11 + $0x68] sm:$0xff] }
  0x14   : > { %1091 = vmatmul.mubr.msk.bf16.vlgmr.msra.gmra.mrb[0].mxu0 %vm322_vm0, %v300_v9  ;;  %v304_v16 = vpack.c.bf16 %v294_v14, %v293_v13  ;;  %v289_v19 = vld [vmem:[%s274_s11 + $0x30] sm:$0xff]  ;;  %v290_v20 = vld [vmem:[%s274_s11 + $0x38] sm:$0xff]  ;;  %v305_v21 = vpack.c.bf16 %v296_v18, %v295_v17 }
  0x15   : > { %1094 = vmatprep.mubr.msk.bf16.mxu0 %vm322_vm0, %v301_v10  ;;  %1098 = vmatprep.mubr.msk.bf16.mxu1 %vm322_vm0, %v303_v15  ;;  %v302_v22 = vpack.c.bf16 %v290_v20, %v289_v19  ;;  %v297_v23 = vld [vmem:[%s274_s11 + $0x70] sm:$0xff]  ;;  %v298_v24 = vld [vmem:[%s274_s11 + $0x78] sm:$0xff] }
  0x16   : > { %1099 = vmatmul.mubr.msk.bf16.vlgmr.msra.gmra.mrb[0].mxu1 %vm322_vm0, %v304_v16  ;;  %v306_v25 = vpack.c.bf16 %v298_v24, %v297_v23  ;;  %1127 = vmatpush3.bf16.msra.mxu0 %v1159_v27 }
  0x17   : > { %1102 = vmatprep.mubr.msk.bf16.mxu1 %vm322_vm0, %v305_v21  ;;  %1107 = vmatpush3.bf16.msra.mxu1 %v1157_v1  ;;  %v1160_v21 = vld [vmem:[%s1511_s5 + $0x8] sm:$0xff]  }
  0x18   : > { %1108 = vmatprep.subr.bf16.mxu1 %v1158_v26  ;;  %1128 = vmatprep.subr.bf16.mxu0 %v1160_v21 }
  0x1a   : > { %1129 = vmatpush3.bf16.msra.mxu0 %v1160_v21 }
  0x1b   : > { %1109 = vmatpush3.bf16.msra.mxu1 %v1158_v26 }
  0x1c   : > { %1095 = vmatmul.mubr.msk.bf16.gmra.mrb[4].mxu0 %vm322_vm0, %v302_v22  ;;  %v1035_v22 = vld [vmem:[%s1510_s4] ss:$0 sm:$0xff] }
  0x1e   : > { %1103 = vmatmul.mubr.msk.bf16.gmra.mrb[4].mxu1 %vm322_vm0, %v306_v25 }
  0xe7   : > { %v1092_v29 = vpop.f32.mrb[0].mxu0 }
  0xe8   : > { %v390_v30 = vadd.f32 %v1092_v29, %v1025_v28  ;;  %v381_v31 = vpop.f32.mrb[1].mxu0 }
  0xe9   : > { %v382_v32 = vadd.f32 %v1025_v28, %v381_v31  ;;  %v1093_v33 = vpop.f32.mrb[2].mxu0  ;;  %v1100_v36 = vpop.f32.mrb[0].mxu1 }
  0xea   : > { %v393_v34 = vadd.f32 %v1093_v33, %v1025_v28  ;;  %v384_v35 = vpop.f32.mrb[3].mxu0  ;;  %v422_v38 = vadd.f32 %v1100_v36, %v1025_v28  ;;  %v413_v39 = vpop.f32.mrb[1].mxu1  ;;  %v446_v40 = vmax.f32 %v390_v30, 0.0 }
  0xeb   : > { %v385_v37 = vadd.f32 %v1025_v28, %v384_v35  ;;  %v414_v42 = vadd.f32 %v1025_v28, %v413_v39  ;;  %v1101_v43 = vpop.f32.mrb[2].mxu1  ;;  %v444_v44 = vmax.f32 %v382_v32, 0.0 }
  0xec   : > { %v447_v41 = vmax.f32 %v393_v34, 0.0  ;;  %v454_v46 = vmax.f32 %v422_v38, 0.0  ;;  %v425_v47 = vadd.f32 %v1101_v43, %v1025_v28  ;;  %v416_v48 = vpop.f32.mrb[3].mxu1 }
  0xed   : > { %v445_v45 = vmax.f32 %v385_v37, 0.0  ;;  %v452_v50 = vmax.f32 %v414_v42, 0.0  ;;  %v417_v51 = vadd.f32 %v1025_v28, %v416_v48 }
  0xee   : > { %v461_v49 = vpack.c.bf16 %v447_v41, %v446_v40  ;;  %v455_v54 = vmax.f32 %v425_v47, 0.0 }
  0xef   : > { %v460_v52 = vpack.c.bf16 %v445_v45, %v444_v44  ;;  %v1096_v53 = vpop.f32.mrb[4].mxu0  ;;  %v453_v57 = vmax.f32 %v417_v51, 0.0 }
  0xf0   : > { %v406_v55 = vadd.f32 %v1096_v53, %v1025_v28  ;;  %v397_v56 = vpop.f32.mrb[5].mxu0  ;;  %v465_v60 = vpack.c.bf16 %v455_v54, %v454_v46 }
  0xf1   : > { %v398_v58 = vadd.f32 %v1025_v28, %v397_v56  ;;  %v1097_v59 = vpop.f32.mrb[6].mxu0  ;;  %1110 = vmatprep.mubr.msk.bf16.mxu1 %vm491_vm1, %v460_v52  ;;  %v464_v0 = vpack.c.bf16 %v453_v57, %v452_v50  ;;  %v1104_v1 = vpop.f32.mrb[4].mxu1 }
  0xf2   : > { %v450_v61 = vmax.f32 %v406_v55, 0.0  ;;  %v409_v62 = vadd.f32 %v1097_v59, %v1025_v28  ;;  %v400_v63 = vpop.f32.mrb[7].mxu0  ;;  %1111 = vmatmul.mubr.msk.bf16.vlgmr.msra.gmra.mrb[8].mxu1 %vm491_vm1, %v461_v49  ;;  %v438_v3 = vadd.f32 %v1104_v1, %v1025_v28  ;;  %v429_v4 = vpop.f32.mrb[5].mxu1 }
  0xf3   : > { %v401_v2 = vadd.f32 %v1025_v28, %v400_v63  ;;  %v430_v6 = vadd.f32 %v1025_v28, %v429_v4  ;;  %v1105_v7 = vpop.f32.mrb[6].mxu1  ;;  %v448_v8 = vmax.f32 %v398_v58, 0.0 }
  0xf4   : > { %v451_v5 = vmax.f32 %v409_v62, 0.0  ;;  %v458_v10 = vmax.f32 %v438_v3, 0.0  ;;  %v441_v11 = vadd.f32 %v1105_v7, %v1025_v28  ;;  %v432_v12 = vpop.f32.mrb[7].mxu1 }
  0xf5   : > { %v449_v9 = vmax.f32 %v401_v2, 0.0  ;;  %v456_v14 = vmax.f32 %v430_v6, 0.0  ;;  %v433_v15 = vadd.f32 %v1025_v28, %v432_v12 }
  0xf6   : > { %v463_v13 = vpack.c.bf16 %v451_v5, %v450_v61  ;;  %v459_v17 = vmax.f32 %v441_v11, 0.0 }
  0xf7   : > { %v462_v16 = vpack.c.bf16 %v449_v9, %v448_v8  ;;  %v457_v18 = vmax.f32 %v433_v15, 0.0  ;;  %v781_v15 = vlaneseq }
  0xf8   : > { %v467_v19 = vpack.c.bf16 %v459_v17, %v458_v10  ;;  %v1046_v17 = vld [vmem:[%s1512_s6] ss:$0 sm:$0xff] }
  0xf9   : > { %1114 = vmatprep.mubr.msk.bf16.mxu1 %vm491_vm1, %v462_v16  ;;  %v466_v20 = vpack.c.bf16 %v457_v18, %v456_v14  ;;  %v1334_v16 = vand.u32 127, %v781_v15 }
  0xfa   : > { %1115 = vmatmul.mubr.msk.bf16.gmra.mrb[12].mxu1 %vm491_vm1, %v463_v13 }
  0xfb   : > { %1118 = vmatprep.mubr.msk.bf16.mxu1 %vm491_vm1, %v464_v0  ;;  %vm783_vm2 = vcmp.lt.s32.totalorder %v1334_v16, 8 }
 0x102   : > { %1119 = vmatmul.mubr.msk.bf16.gmra.mrb[16].mxu1 %vm491_vm1, %v465_v60 }
 0x103   : > { %1122 = vmatprep.mubr.msk.bf16.mxu1 %vm491_vm1, %v466_v20 }
 0x10a   : > { %1123 = vmatmul.mubr.msk.bf16.gmra.mrb[20].mxu1 %vm491_vm1, %v467_v19 }
 0x1c5   : > { %v1112_v23 = vpop.f32.mrb[8].mxu1 }
 0x1c6   : > { %v559_v24 = vadd.f32 %v1112_v23, %v1035_v22  ;;  %v550_v25 = vpop.f32.mrb[9].mxu1 }
 0x1c7   : > { %v551_v26 = vadd.f32 %v1035_v22, %v550_v25  ;;  %v1113_v27 = vpop.f32.mrb[10].mxu1 }
 0x1c8   : > { %v562_v28 = vadd.f32 %v1113_v27, %v1035_v22  ;;  %v553_v29 = vpop.f32.mrb[11].mxu1  ;;  %v615_v31 = vmax.f32 %v559_v24, 0.0 }
 0x1c9   : > { %v554_v30 = vadd.f32 %v1035_v22, %v553_v29  ;;  %v613_v33 = vmax.f32 %v551_v26, 0.0 }
 0x1ca   : > { %v616_v32 = vmax.f32 %v562_v28, 0.0 }
 0x1cb   : > { %v614_v34 = vmax.f32 %v554_v30, 0.0 }
 0x1cc   : > { %v630_v35 = vpack.c.bf16 %v616_v32, %v615_v31 }
 0x1cd   : > { %v629_v36 = vpack.c.bf16 %v614_v34, %v613_v33  ;;  %v1116_v37 = vpop.f32.mrb[12].mxu1 }
 0x1ce   : > { %v575_v38 = vadd.f32 %v1116_v37, %v1035_v22  ;;  %v566_v39 = vpop.f32.mrb[13].mxu1 }
 0x1cf   : > { %v567_v40 = vadd.f32 %v1035_v22, %v566_v39  ;;  %v1117_v41 = vpop.f32.mrb[14].mxu1  ;;  %1130 = vmatprep.mubr.msk.bf16.mxu0 %vm491_vm1, %v629_v36 }
 0x1d0   : > { %v578_v42 = vadd.f32 %v1117_v41, %v1035_v22  ;;  %v569_v43 = vpop.f32.mrb[15].mxu1  ;;  %1131 = vmatmul.mubr.msk.bf16.vlgmr.msra.gmra.mrb[8].mxu0 %vm491_vm1, %v630_v35  ;;  %v619_v45 = vmax.f32 %v575_v38, 0.0 }
 0x1d1   : > { %v570_v44 = vadd.f32 %v1035_v22, %v569_v43  ;;  %v617_v47 = vmax.f32 %v567_v40, 0.0 }
 0x1d2   : > { %v620_v46 = vmax.f32 %v578_v42, 0.0 }
 0x1d3   : > { %v618_v48 = vmax.f32 %v570_v44, 0.0 }
 0x1d4   : > { %v632_v49 = vpack.c.bf16 %v620_v46, %v619_v45 }
 0x1d5   : > { %v631_v50 = vpack.c.bf16 %v618_v48, %v617_v47  ;;  %v1120_v51 = vpop.f32.mrb[16].mxu1 }
 0x1d6   : > { %v591_v52 = vadd.f32 %v1120_v51, %v1035_v22  ;;  %v582_v53 = vpop.f32.mrb[17].mxu1 }
 0x1d7   : > { %v583_v54 = vadd.f32 %v1035_v22, %v582_v53  ;;  %v1121_v55 = vpop.f32.mrb[18].mxu1  ;;  %1134 = vmatprep.mubr.msk.bf16.mxu0 %vm491_vm1, %v631_v50 }
 0x1d8   : > { %v594_v56 = vadd.f32 %v1121_v55, %v1035_v22  ;;  %v585_v57 = vpop.f32.mrb[19].mxu1  ;;  %1135 = vmatmul.mubr.msk.bf16.gmra.mrb[12].mxu0 %vm491_vm1, %v632_v49  ;;  %v623_v59 = vmax.f32 %v591_v52, 0.0 }
 0x1d9   : > { %v586_v58 = vadd.f32 %v1035_v22, %v585_v57  ;;  %v621_v61 = vmax.f32 %v583_v54, 0.0 }
 0x1da   : > { %v624_v60 = vmax.f32 %v594_v56, 0.0 }
 0x1db   : > { %v622_v62 = vmax.f32 %v586_v58, 0.0 }
 0x1dc   : > { %v634_v63 = vpack.c.bf16 %v624_v60, %v623_v59 }
 0x1dd   : > { %v633_v0 = vpack.c.bf16 %v622_v62, %v621_v61  ;;  %v1124_v1 = vpop.f32.mrb[20].mxu1 }
 0x1de   : > { %v607_v2 = vadd.f32 %v1124_v1, %v1035_v22  ;;  %v598_v3 = vpop.f32.mrb[21].mxu1 }
 0x1df   : > { %v599_v4 = vadd.f32 %v1035_v22, %v598_v3  ;;  %v1125_v5 = vpop.f32.mrb[22].mxu1  ;;  %1138 = vmatprep.mubr.msk.bf16.mxu0 %vm491_vm1, %v633_v0 }
 0x1e0   : > { %v610_v6 = vadd.f32 %v1125_v5, %v1035_v22  ;;  %v601_v7 = vpop.f32.mrb[23].mxu1  ;;  %1139 = vmatmul.mubr.msk.bf16.gmra.mrb[16].mxu0 %vm491_vm1, %v634_v63  ;;  %v627_v9 = vmax.f32 %v607_v2, 0.0 }
 0x1e1   : > { %v602_v8 = vadd.f32 %v1035_v22, %v601_v7  ;;  %v625_v11 = vmax.f32 %v599_v4, 0.0 }
 0x1e2   : > { %v628_v10 = vmax.f32 %v610_v6, 0.0 }
 0x1e3   : > { %v626_v12 = vmax.f32 %v602_v8, 0.0 }
 0x1e4   : > { %v636_v13 = vpack.c.bf16 %v628_v10, %v627_v9 }
 0x1e5   : > { %v635_v14 = vpack.c.bf16 %v626_v12, %v625_v11 }
 0x1e7   : > { %1142 = vmatprep.mubr.msk.bf16.mxu0 %vm491_vm1, %v635_v14 }
 0x1e8   : > { %1143 = vmatmul.mubr.msk.bf16.gmra.mrb[20].mxu0 %vm491_vm1, %v636_v13 }
 0x2a3   : > { %v1132_v18 = vpop.f32.mrb[8].mxu0 }
 0x2a4   : > { %v727_v19 = vadd.f32 %v1132_v18, %v1046_v17  ;;  %v718_v20 = vpop.f32.mrb[9].mxu0 }
 0x2a5   : > { %v719_v21 = vadd.f32 %v1046_v17, %v718_v20  ;;  %v1133_v22 = vpop.f32.mrb[10].mxu0 }
 0x2a6   : > { %v730_v23 = vadd.f32 %v1133_v22, %v1046_v17  ;;  %v721_v24 = vpop.f32.mrb[11].mxu0  ;;  %v786_v25 = vsel %vm783_vm2, %v727_v19, -1e+30 }
 0x2a7   : > { %v722_v26 = vadd.f32 %v1046_v17, %v721_v24  ;;  %804 = vmax.xlane.f32.xlu1 %v786_v25  ;;  %v784_v27 = vsel %vm783_vm2, %v719_v21, -1e+30 }
 0x2a8   : > { %800 = vmax.xlane.f32.xlu0 %v784_v27  ;;  %v1346_v28 = vsel %vm783_vm2, %v730_v23, -1e+30 }
 0x2a9   : > { %v1351_v30 = vsel %vm783_vm2, %v722_v26, -1e+30 }
 0x2ab   : > { %806 = vmax.xlane.f32.xlu1 %v1346_v28  ;;  %v1136_v29 = vpop.f32.mrb[12].mxu0 }
 0x2ac   : > { %v743_v31 = vadd.f32 %v1136_v29, %v1046_v17  ;;  %v734_v32 = vpop.f32.mrb[13].mxu0  ;;  %802 = vmax.xlane.f32.xlu0 %v1351_v30 }
 0x2ad   : > { %v1137_v33 = vpop.f32.mrb[14].mxu0  ;;  %v735_v37 = vadd.f32 %v1046_v17, %v734_v32 }
 0x2ae   : > { %v746_v34 = vadd.f32 %v1137_v33, %v1046_v17  ;;  %v737_v35 = vpop.f32.mrb[15].mxu0  ;;  %v790_v36 = vsel %vm783_vm2, %v743_v31, -1e+30 }
 0x2af   : > { %v738_v38 = vadd.f32 %v1046_v17, %v737_v35  ;;  %v1360_v41 = vsel %vm783_vm2, %v735_v37, -1e+30 }
 0x2b0   : > { %812 = vmax.xlane.f32.xlu0 %v790_v36  ;;  %v791_v39 = vsel %vm783_vm2, %v746_v34, -1e+30 }
 0x2b1   : > { %814 = vmax.xlane.f32.xlu1 %v791_v39  ;;  %v789_v44 = vsel %vm783_vm2, %v738_v38, -1e+30 }
 0x2b3   : > { %v1140_v40 = vpop.f32.mrb[16].mxu0 }
 0x2b4   : > { %v759_v42 = vadd.f32 %v1140_v40, %v1046_v17  ;;  %v750_v43 = vpop.f32.mrb[17].mxu0  ;;  %808 = vmax.xlane.f32.xlu0 %v1360_v41 }
 0x2b5   : > { %v1141_v45 = vpop.f32.mrb[18].mxu0  ;;  %810 = vmax.xlane.f32.xlu1 %v789_v44  ;;  %v751_v49 = vadd.f32 %v1046_v17, %v750_v43 }
 0x2b6   : > { %v762_v46 = vadd.f32 %v1141_v45, %v1046_v17  ;;  %v753_v47 = vpop.f32.mrb[19].mxu0  ;;  %v1367_v48 = vsel %vm783_vm2, %v759_v42, -1e+30 }
 0x2b7   : > { %v754_v50 = vadd.f32 %v1046_v17, %v753_v47  ;;  %v1377_v53 = vsel %vm783_vm2, %v751_v49, -1e+30 }
 0x2b8   : > { %820 = vmax.xlane.f32.xlu0 %v1367_v48  ;;  %v1372_v51 = vsel %vm783_vm2, %v762_v46, -1e+30 }
 0x2b9   : > { %822 = vmax.xlane.f32.xlu1 %v1372_v51  ;;  %v1382_v55 = vsel %vm783_vm2, %v754_v50, -1e+30 }
 0x2bb   : > { %v1144_v52 = vpop.f32.mrb[20].mxu0 }
 0x2bc   : > { %v766_v54 = vpop.f32.mrb[21].mxu0  ;;  %816 = vmax.xlane.f32.xlu0 %v1377_v53  ;;  %v775_v59 = vadd.f32 %v1144_v52, %v1046_v17 }
 0x2bd   : > { %v767_v56 = vadd.f32 %v1046_v17, %v766_v54  ;;  %v1145_v57 = vpop.f32.mrb[22].mxu0  ;;  %818 = vmax.xlane.f32.xlu1 %v1382_v55 }
 0x2be   : > { %v769_v58 = vpop.f32.mrb[23].mxu0  ;;  %v778_v62 = vadd.f32 %v1145_v57, %v1046_v17  ;;  %v1397_v0 = vsel %vm783_vm2, %v775_v59, -1e+30 }
 0x2bf   : > { %v770_v60 = vadd.f32 %v1046_v17, %v769_v58  ;;  %v1387_v61 = vsel %vm783_vm2, %v767_v56, -1e+30 }
 0x2c0   : > { %824 = vmax.xlane.f32.xlu0 %v1387_v61  ;;  %v1402_v1 = vsel %vm783_vm2, %v778_v62, -1e+30 }
 0x2c1   : > { %v1392_v63 = vsel %vm783_vm2, %v770_v60, -1e+30 }
 0x2c2   : > { %826 = vmax.xlane.f32.xlu1 %v1392_v63 }
 0x2c4   : > { %828 = vmax.xlane.f32.xlu0 %v1397_v0 }
 0x2c6   : > { %830 = vmax.xlane.f32.xlu1 %v1402_v1 }
 0x334   : > { %v805_v2 = vpop.xlane.xlu1 %804 }
 0x335   : > { %v834_v3 = vsub.f32 %v786_v25, %v805_v2  ;;  %v801_v4 = vpop.xlane.xlu0 %800 }
 0x336   : > { %v832_v5 = vsub.f32 %v784_v27, %v801_v4 }
 0x337   : > { %v852_v6 = vmul.f32 1.442695, %v834_v3 }
 0x338   : > { %v848_v7 = vmul.f32 1.442695, %v832_v5  ;;  %v807_v8 = vpop.xlane.xlu1 %806 }
 0x339   : > { %1161 = vpow2.f32 %v852_v6  ;;  %v835_v9 = vsub.f32 %v1346_v28, %v807_v8  ;;  %v803_v10 = vpop.xlane.xlu0 %802 }
 0x33a   : > { %v833_v11 = vsub.f32 %v1351_v30, %v803_v10  ;;  %1163 = vpow2.f32 %v848_v7 }
 0x33b   : > { %v854_v12 = vmul.f32 1.442695, %v835_v9 }
 0x33c   : > { %v850_v13 = vmul.f32 1.442695, %v833_v11 }
 0x33d   : > { %1165 = vpow2.f32 %v854_v12  ;;  %v813_v14 = vpop.xlane.xlu0 %812 }
 0x33e   : > { %v838_v15 = vsub.f32 %v790_v36, %v813_v14  ;;  %v815_v16 = vpop.xlane.xlu1 %814  ;;  %1167 = vpow2.f32 %v850_v13 }
 0x33f   : > { %v839_v17 = vsub.f32 %v791_v39, %v815_v16 }
 0x340   : > { %v860_v18 = vmul.f32 1.442695, %v838_v15 }
 0x341   : > { %v862_v19 = vmul.f32 1.442695, %v839_v17  ;;  %v809_v20 = vpop.xlane.xlu0 %808 }
 0x342   : > { %1169 = vpow2.f32 %v860_v18  ;;  %v836_v21 = vsub.f32 %v1360_v41, %v809_v20  ;;  %v811_v22 = vpop.xlane.xlu1 %810 }
 0x343   : > { %v1408_v23 = vpop.eup %1161  ;;  %v837_v24 = vsub.f32 %v789_v44, %v811_v22  ;;  %1171 = vpow2.f32 %v862_v19 }
 0x344   : > { %v856_v25 = vmul.f32 1.442695, %v836_v21  ;;  %884 = vadd.xlane.f32.xlu0 %v1408_v23  ;;  %v1411_v28 = vpop.eup %1163 }
 0x345   : > { %v858_v26 = vmul.f32 1.442695, %v837_v24  ;;  %v821_v27 = vpop.xlane.xlu0 %820 }
 0x346   : > { %1173 = vpow2.f32 %v856_v25  ;;  %v842_v29 = vsub.f32 %v1367_v48, %v821_v27  ;;  %v823_v30 = vpop.xlane.xlu1 %822 }
 0x347   : > { %v1414_v31 = vpop.eup %1165  ;;  %v843_v32 = vsub.f32 %v1372_v51, %v823_v30  ;;  %1175 = vpow2.f32 %v858_v26 }
 0x348   : > { %v868_v33 = vmul.f32 1.442695, %v842_v29  ;;  %886 = vadd.xlane.f32.xlu1 %v1414_v31  ;;  %880 = vadd.xlane.f32.xlu0 %v1411_v28  ;;  %v1420_v38 = vpop.eup %1167 }
 0x349   : > { %v870_v34 = vmul.f32 1.442695, %v843_v32  ;;  %v817_v35 = vpop.xlane.xlu0 %816 }
 0x34a   : > { %1177 = vpow2.f32 %v868_v33  ;;  %v840_v36 = vsub.f32 %v1377_v53, %v817_v35  ;;  %v819_v37 = vpop.xlane.xlu1 %818 }
 0x34b   : > { %v841_v39 = vsub.f32 %v1382_v55, %v819_v37  ;;  %1179 = vpow2.f32 %v870_v34 }
 0x34c   : > { %v1423_v40 = vpop.eup %1169  ;;  %v864_v41 = vmul.f32 1.442695, %v840_v36  ;;  %882 = vadd.xlane.f32.xlu1 %v1420_v38 }
 0x34d   : > { %v866_v42 = vmul.f32 1.442695, %v841_v39  ;;  %892 = vadd.xlane.f32.xlu0 %v1423_v40  ;;  %v825_v43 = vpop.xlane.xlu0 %824  ;;  %v1428_v45 = vpop.eup %1171 }
 0x34e   : > { %1181 = vpow2.f32 %v864_v41  ;;  %v844_v44 = vsub.f32 %v1387_v61, %v825_v43 }
 0x34f   : > { %v827_v46 = vpop.xlane.xlu1 %826  ;;  %1183 = vpow2.f32 %v866_v42 }
 0x350   : > { %v1430_v47 = vpop.eup %1173  ;;  %v872_v48 = vmul.f32 1.442695, %v844_v44  ;;  %v845_v49 = vsub.f32 %v1392_v63, %v827_v46  ;;  %894 = vadd.xlane.f32.xlu1 %v1428_v45 }
 0x351   : > { %888 = vadd.xlane.f32.xlu0 %v1430_v47  ;;  %v829_v50 = vpop.xlane.xlu0 %828  ;;  %v1436_v53 = vpop.eup %1175 }
 0x352   : > { %1185 = vpow2.f32 %v872_v48  ;;  %v874_v51 = vmul.f32 1.442695, %v845_v49  ;;  %v846_v52 = vsub.f32 %v1397_v0, %v829_v50 }
 0x353   : > { %v831_v54 = vpop.xlane.xlu1 %830 }
 0x354   : > { %v1438_v55 = vpop.eup %1177  ;;  %1187 = vpow2.f32 %v874_v51  ;;  %v876_v56 = vmul.f32 1.442695, %v846_v52  ;;  %v847_v57 = vsub.f32 %v1402_v1, %v831_v54  ;;  %890 = vadd.xlane.f32.xlu1 %v1436_v53 }
 0x355   : > { %900 = vadd.xlane.f32.xlu0 %v1438_v55  ;;  %v1443_v59 = vpop.eup %1179 }
 0x356   : > { %1189 = vpow2.f32 %v876_v56  ;;  %v878_v58 = vmul.f32 1.442695, %v847_v57 }
 0x358   : > { %v1445_v60 = vpop.eup %1181  ;;  %1191 = vpow2.f32 %v878_v58  ;;  %902 = vadd.xlane.f32.xlu1 %v1443_v59 }
 0x359   : > { %896 = vadd.xlane.f32.xlu0 %v1445_v60  ;;  %v1449_v61 = vpop.eup %1183 }
 0x35c   : > { %v1451_v62 = vpop.eup %1185  ;;  %898 = vadd.xlane.f32.xlu1 %v1449_v61 }
 0x35d   : > { %904 = vadd.xlane.f32.xlu0 %v1451_v62 }
 0x35e   : > { %v1455_v63 = vpop.eup %1187 }
 0x360   : > { %v1457_v0 = vpop.eup %1189  ;;  %906 = vadd.xlane.f32.xlu1 %v1455_v63 }
 0x361   : > { %908 = vadd.xlane.f32.xlu0 %v1457_v0 }
 0x362   : > { %v1461_v1 = vpop.eup %1191 }
 0x364   : > { %910 = vadd.xlane.f32.xlu1 %v1461_v1 }
 0x3d1   : > { %v885_v2 = vpop.xlane.xlu0 %884 }
 0x3d2   : > { %1193 = vrcp.f32 %v885_v2 }
 0x3d5   : > { %v887_v3 = vpop.xlane.xlu1 %886  ;;  %v881_v4 = vpop.xlane.xlu0 %880 }
 0x3d6   : > { %1195 = vrcp.f32 %v887_v3 }
 0x3d7   : > { %1197 = vrcp.f32 %v881_v4 }
 0x3d9   : > { %v883_v5 = vpop.xlane.xlu1 %882 }
 0x3da   : > { %1199 = vrcp.f32 %v883_v5  ;;  %v893_v6 = vpop.xlane.xlu0 %892 }
 0x3db   : > { %1201 = vrcp.f32 %v893_v6 }
 0x3dc   : > { %v1194_v7 = vpop.eup %1193 }
 0x3dd   : > { %v917_v8 = vmul.f32 %v1194_v7, %v1408_v23  ;;  %v895_v9 = vpop.xlane.xlu1 %894 }
 0x3de   : > { %1203 = vrcp.f32 %v895_v9  ;;  %v889_v10 = vpop.xlane.xlu0 %888 }
 0x3df   : > { %946 = vst [vmem:[%s1469_s27 + $0x10] sm:$0xff] %v917_v8  ;;  %1205 = vrcp.f32 %v889_v10 }
 0x3e0   : > { %v1196_v11 = vpop.eup %1195 }
 0x3e1   : > { %v1198_v12 = vpop.eup %1197  ;;  %v919_v13 = vmul.f32 %v1196_v11, %v1414_v31  ;;  %v891_v14 = vpop.xlane.xlu1 %890 }
 0x3e2   : > { %v913_v15 = vmul.f32 %v1198_v12, %v1411_v28  ;;  %1207 = vrcp.f32 %v891_v14  ;;  %v901_v16 = vpop.xlane.xlu0 %900 }
 0x3e3   : > { %947 = vst [vmem:[%s1469_s27 + $0x18] sm:$0xff] %v919_v13  ;;  %1209 = vrcp.f32 %v901_v16 }
 0x3e4   : > { %v1200_v17 = vpop.eup %1199  ;;  %944 = vst [vmem:[%s1469_s27] sm:$0xff] %v913_v15 }
 0x3e5   : > { %v1202_v18 = vpop.eup %1201  ;;  %v915_v19 = vmul.f32 %v1200_v17, %v1420_v38  ;;  %v903_v20 = vpop.xlane.xlu1 %902 }
 0x3e6   : > { %v925_v21 = vmul.f32 %v1202_v18, %v1423_v40  ;;  %1211 = vrcp.f32 %v903_v20  ;;  %v897_v22 = vpop.xlane.xlu0 %896 }
 0x3e7   : > { %945 = vst [vmem:[%s1469_s27 + $0x8] sm:$0xff] %v915_v19  ;;  %1213 = vrcp.f32 %v897_v22 }
 0x3e8   : > { %v1204_v23 = vpop.eup %1203  ;;  %950 = vst [vmem:[%s1469_s27 + $0x30] sm:$0xff] %v925_v21 }
 0x3e9   : > { %v1206_v24 = vpop.eup %1205  ;;  %v927_v25 = vmul.f32 %v1204_v23, %v1428_v45  ;;  %v899_v26 = vpop.xlane.xlu1 %898 }
 0x3ea   : > { %v921_v27 = vmul.f32 %v1206_v24, %v1430_v47  ;;  %1215 = vrcp.f32 %v899_v26  ;;  %v905_v28 = vpop.xlane.xlu0 %904 }
 0x3eb   : > { %951 = vst [vmem:[%s1469_s27 + $0x38] sm:$0xff] %v927_v25  ;;  %1217 = vrcp.f32 %v905_v28 }
 0x3ec   : > { %v1208_v29 = vpop.eup %1207  ;;  %948 = vst [vmem:[%s1469_s27 + $0x20] sm:$0xff] %v921_v27 }
 0x3ed   : > { %v1210_v30 = vpop.eup %1209  ;;  %v923_v31 = vmul.f32 %v1208_v29, %v1436_v53  ;;  %v907_v32 = vpop.xlane.xlu1 %906 }
 0x3ee   : > { %v933_v33 = vmul.f32 %v1210_v30, %v1438_v55  ;;  %1219 = vrcp.f32 %v907_v32  ;;  %v909_v34 = vpop.xlane.xlu0 %908 }
 0x3ef   : > { %949 = vst [vmem:[%s1469_s27 + $0x28] sm:$0xff] %v923_v31  ;;  %1221 = vrcp.f32 %v909_v34 }
 0x3f0   : > { %v1212_v35 = vpop.eup %1211  ;;  %954 = vst [vmem:[%s1469_s27 + $0x50] sm:$0xff] %v933_v33 }
 0x3f1   : > { %v1214_v36 = vpop.eup %1213  ;;  %v935_v37 = vmul.f32 %v1212_v35, %v1443_v59  ;;  %v911_v38 = vpop.xlane.xlu1 %910 }
 0x3f2   : > { %v929_v39 = vmul.f32 %v1214_v36, %v1445_v60  ;;  %1223 = vrcp.f32 %v911_v38 }
 0x3f3   : > { %955 = vst [vmem:[%s1469_s27 + $0x58] sm:$0xff] %v935_v37 }
 0x3f4   : > { %v1216_v40 = vpop.eup %1215  ;;  %952 = vst [vmem:[%s1469_s27 + $0x40] sm:$0xff] %v929_v39 }
 0x3f5   : > { %v1218_v41 = vpop.eup %1217  ;;  %v931_v42 = vmul.f32 %v1216_v40, %v1449_v61 }
 0x3f6   : > { %v937_v43 = vmul.f32 %v1218_v41, %v1451_v62 }
 0x3f7   : > { %953 = vst [vmem:[%s1469_s27 + $0x48] sm:$0xff] %v931_v42 }
 0x3f8   : > { %v1220_v44 = vpop.eup %1219  ;;  %956 = vst [vmem:[%s1469_s27 + $0x60] sm:$0xff] %v937_v43 }
 0x3f9   : > { %v1222_v45 = vpop.eup %1221  ;;  %v939_v46 = vmul.f32 %v1220_v44, %v1455_v63 }
 0x3fa   : > { %v941_v47 = vmul.f32 %v1222_v45, %v1457_v0 }
 0x3fb   : > { %957 = vst [vmem:[%s1469_s27 + $0x68] sm:$0xff] %v939_v46 }
 0x3fc   : > { %v1224_v48 = vpop.eup %1223  ;;  %958 = vst [vmem:[%s1469_s27 + $0x70] sm:$0xff] %v941_v47 }
 0x3fd   : > { %v943_v49 = vmul.f32 %v1224_v48, %v1461_v1 }
 0x3ff   : > { %959 = vst [vmem:[%s1469_s27 + $0x78] sm:$0xff] %v943_v49 }
 0x400 PF: > { %s17_s24 = sadd.s32 1, %s1231_s24  }
 0x401   : > { %p14_p4 = scmp.ge.s32.totalorder %s17_s24, 4  }
 0x403   :  { %16 = sbr.rel (!%p14_p4) target bundleno = 1 (0x1), region = 78 }

</bundles_post_ra>
